<compile_context>
chip_gen: v5e
topology: v5e:2x2
jax: 0.10.0
libtpu: 0.0.40
codegen_flags: <defaults>
</compile_context>

<pallas_src>
import functools

import jax
import jax.numpy as jnp
from jax.experimental import pallas as pl
from jax.experimental.pallas import tpu as pltpu


def _conv_wide_kernel(x_ref, w_ref, b_ref, o_ref, xs_ref, p_ref, *,
                      nb, ic, kh_size, kw_size, height, width, tail):
    """One batch-block (NB images) per grid step.

    x_ref : (NB, IC, H*W)        bf16  flattened NCHW activations (no wrapper padding)
    w_ref : (8, 32)              bf16  weights, OC padded 6->8, K padded 27->32
    b_ref : (8, 1)               f32   bias (padded channels are 0)
    o_ref : (NB, 8, H*W)         f32   wide output rows; invalid cols/channels dropped later
    xs_ref: (IC, NB*H*W + tail)  f32   lane-packed images + zeroed tap-overhang tail
    p_ref : (32, NB*H*W)         f32   im2col patch matrix (rows 27..31 zeroed)
    """
    hw = height * width
    span = nb * hw                       # packed lane width (multiple of 128 for 16x16)

    # 1) Pack the NB images back-to-back along the lane axis (offsets are multiples of
    #    128 -> clean slab copies) and zero the tail so the last image's tap overhang
    #    reads zeros instead of stale VMEM.
    for i in range(nb):
        xs_ref[:, i * hw:(i + 1) * hw] = x_ref[i].astype(jnp.float32)
    xs_ref[:, span:] = jnp.zeros((ic, tail), jnp.float32)

    # 2) im2col written directly into VMEM scratch (no sublane concatenate relayout).
    #    Zero the K-padding rows first: stale VMEM * zero-weight could still be NaN.
    n_rows = kh_size * kw_size * ic
    p_ref[n_rows:, :] = jnp.zeros((p_ref.shape[0] - n_rows, span), jnp.float32)
    for kh in range(kh_size):
        for kw in range(kw_size):
            t = kh * kw_size + kw
            off = kh * width + kw        # tap (kh,kw) == contiguous lane slice of xs
            p_ref[t * ic:(t + 1) * ic, :] = xs_ref[:, off:off + span]

    # 3) Single fused MXU matmul (bf16 x bf16 -> f32 accumulate) + fused bias add.
    out = jnp.dot(w_ref[...], p_ref[...].astype(jnp.bfloat16),
                  preferred_element_type=jnp.float32) + b_ref[...]      # (8, span) f32

    # 4) Lane-dense per-image output stores (source offsets are multiples of 128).
    for i in range(nb):
        o_ref[i] = out[:, i * hw:(i + 1) * hw]


def _pick_batch_block(n, per_image_vmem_bytes, vmem_budget_bytes=8 << 20, cap=64):
    """Images packed per grid step: large enough to amortize the ~0.35us per-step
    overhead, small enough to (a) keep >= 2 grid steps so v7x can shard the batch across
    both TensorCores and (b) stay well inside VMEM (v7x has 64 MiB vs 128 MiB v5e/v6e)."""
    if n <= 1:
        return 1
    max_nb = min(cap, max(1, vmem_budget_bytes // max(1, per_image_vmem_bytes)), n // 2)
    for nb in range(int(max_nb), 0, -1):
        if n % nb == 0:
            return nb
    return 1


def tudui_forward(x_nchw, weight_oihw, bias):
    """Matches Tudui.forward: y = Conv2d(3->6, k=3, s=1, p=0)(x).  NCHW in, NCHW out."""
    N, IC, H, W = x_nchw.shape
    OC, IC_w, KH, KW = weight_oihw.shape
    assert IC_w == IC
    Ho, Wo = H - KH + 1, W - KW + 1
    HW = H * W
    K = KH * KW * IC
    OC_PAD = 8                                   # 8-sublane aligned accumulator / output
    K_PAD = 32                                   # cleanly tiled MXU LHS
    TAIL = 128                                   # lane overhang for the last image's taps
    # Wide-row im2col assumes stride=1, padding=0, contiguous H*W flattening.
    assert (KH - 1) * W + (KW - 1) <= TAIL

    # bf16 activations / weights in HBM (halves DMA bytes); f32 bias & output.
    x_flat = x_nchw.reshape(N, IC, HW).astype(jnp.bfloat16)       # pure reshape, no pad pass
    w_mat = jnp.transpose(weight_oihw, (0, 2, 3, 1)).reshape(OC, K)  # tap-major / chan-minor
    w_mat = jnp.pad(w_mat, ((0, OC_PAD - OC), (0, K_PAD - K))).astype(jnp.bfloat16)
    b_col = jnp.pad(bias.astype(jnp.float32).reshape(OC, 1), ((0, OC_PAD - OC), (0, 0)))

    per_image_bytes = (2 * IC * HW * 2          # double-buffered bf16 input block
                       + 2 * OC_PAD * HW * 4    # double-buffered f32 output block
                       + IC * HW * 4            # xs scratch
                       + K_PAD * HW * 4)        # patch scratch
    NB = _pick_batch_block(N, per_image_bytes)
    n_blocks = N // NB
    span = NB * HW

    kernel = functools.partial(
        _conv_wide_kernel, nb=NB, ic=IC,
        kh_size=KH, kw_size=KW, height=H, width=W, tail=TAIL)

    y_wide = pl.pallas_call(
        kernel,
        out_shape=jax.ShapeDtypeStruct((N, OC_PAD, HW), jnp.float32),
        grid=(n_blocks,),
        in_specs=[
            pl.BlockSpec((NB, IC, HW), lambda n: (n, 0, 0)),       # batch-block activations
            pl.BlockSpec((OC_PAD, K_PAD), lambda n: (0, 0)),       # weights (resident)
            pl.BlockSpec((OC_PAD, 1), lambda n: (0, 0)),           # bias (resident)
        ],
        out_specs=pl.BlockSpec((NB, OC_PAD, HW), lambda n: (n, 0, 0)),
        scratch_shapes=[
            pltpu.VMEM((IC, span + TAIL), jnp.float32),            # lane-packed activations
            pltpu.VMEM((K_PAD, span), jnp.float32),                # im2col patches
        ],
        compiler_params=pltpu.CompilerParams(dimension_semantics=("parallel",)),
    )(x_flat, w_mat, b_col)

    # Valid conv outputs live at rows < Ho, cols < Wo of each wide (H, W) slab; the two
    # padded output channels are dropped as well.
    # TODO(synk): if this layer had a consumer (activation / pool / next conv), fuse it and
    # this slice into the same pallas_call instead of a standalone XLA slice.
    return y_wide.reshape(N, OC_PAD, H, W)[:, :OC, :Ho, :Wo]


if __name__ == "__main__":
    key = jax.random.PRNGKey(0)
    k_x, k_w, k_b = jax.random.split(key, 3)

    # Shapes implied by Conv2d(3, 6, 3): NCHW input with 3 channels.
    N, IC, H, W = 2, 3, 16, 16
    OC, KH, KW = 6, 3, 3

    x = jax.random.normal(k_x, (N, IC, H, W), dtype=jnp.float32)
    # Deterministic parameter init (synthetic; mimics PyTorch uniform fan-in bound).
    bound = 1.0 / (IC * KH * KW) ** 0.5
    weight = jax.random.uniform(k_w, (OC, IC, KH, KW), jnp.float32, -bound, bound)
    bias = jax.random.uniform(k_b, (OC,), jnp.float32, -bound, bound)

    y = tudui_forward(x, weight, bias)
    jax.block_until_ready(y)

    # Reference: XLA conv on the same bf16-rounded operands (kernel accumulates in f32,
    # so only summation-order differences remain).
    xb = x.astype(jnp.bfloat16).astype(jnp.float32)
    wb = weight.astype(jnp.bfloat16).astype(jnp.float32)
    y_ref = jax.lax.conv_general_dilated(
        xb, wb, window_strides=(1, 1), padding="VALID",
        dimension_numbers=("NCHW", "OIHW", "NCHW"),
        precision=jax.lax.Precision.HIGHEST,
    ) + bias.reshape(1, OC, 1, 1)

    assert y.shape == (N, OC, H - KH + 1, W - KW + 1), y.shape
    assert jnp.allclose(y, y_ref, atol=1e-3, rtol=1e-3), "mismatch vs reference conv"

    print("KERNEL_OK")
</pallas_src>

<mosaic_0001>
module attributes {stable_mosaic.version = 11 : i64} {
  func.func @_conv_wide_kernel(%arg0: i32, %arg1: memref<1x3x256xbf16, #tpu.memory_space<vmem>>, %arg2: memref<8x32xbf16, #tpu.memory_space<vmem>>, %arg3: memref<8x1xf32, #tpu.memory_space<vmem>>, %arg4: memref<1x8x256xf32, #tpu.memory_space<vmem>>, %arg5: memref<3x384xf32, #tpu.memory_space<vmem>>, %arg6: memref<32x256xf32, #tpu.memory_space<vmem>>) attributes {dimension_semantics = [#tpu.dimension_semantics<parallel>], iteration_bounds = array<i64: 2>, scalar_prefetch = 0 : i64, scratch_operands = 2 : i64, tpu.core_type = #tpu.core_type<tc>, window_params = [{transform_indices = @transform_0, window_bounds = array<i64: 1, 3, 256>}, {pipeline_mode = #tpu.pipeline_mode<synchronous>, transform_indices = @transform_1, window_bounds = array<i64: 8, 32>}, {pipeline_mode = #tpu.pipeline_mode<synchronous>, transform_indices = @transform_2, window_bounds = array<i64: 8, 1>}, {transform_indices = @transform_3, window_bounds = array<i64: 1, 8, 256>}]} {
    %c0 = arith.constant 0 : index
    %c0_0 = arith.constant 0 : index
    %c0_1 = arith.constant 0 : index
    %0 = vector.load %arg1[%c0, %c0_0, %c0_1] : memref<1x3x256xbf16, #tpu.memory_space<vmem>>, vector<1x3x256xbf16>
    %1 = vector.shape_cast %0 : vector<1x3x256xbf16> to vector<3x256xbf16>
    %2 = arith.extf %1 : vector<3x256xbf16> to vector<3x256xf32>
    %c0_2 = arith.constant 0 : index
    %c0_3 = arith.constant 0 : index
    %3 = vector.load %arg5[%c0_2, %c0_3] : memref<3x384xf32, #tpu.memory_space<vmem>>, vector<3x256xf32>
    tpu.vector_store %arg5[%c0_2, %c0_3], %2 {strides = array<i32>} : memref<3x384xf32, #tpu.memory_space<vmem>>, vector<3x256xf32>,
    %cst = arith.constant 0.000000e+00 : f32
    %4 = vector.broadcast %cst : f32 to vector<3x128xf32>
    %c0_4 = arith.constant 0 : index
    %c256 = arith.constant 256 : index
    %5 = vector.load %arg5[%c0_4, %c256] : memref<3x384xf32, #tpu.memory_space<vmem>>, vector<3x128xf32>
    tpu.vector_store %arg5[%c0_4, %c256], %4 {strides = array<i32>} : memref<3x384xf32, #tpu.memory_space<vmem>>, vector<3x128xf32>,
    %cst_5 = arith.constant 0.000000e+00 : f32
    %6 = vector.broadcast %cst_5 : f32 to vector<5x256xf32>
    %c27 = arith.constant 27 : index
    %c0_6 = arith.constant 0 : index
    %7 = vector.load %arg6[%c27, %c0_6] : memref<32x256xf32, #tpu.memory_space<vmem>>, vector<5x256xf32>
    tpu.vector_store %arg6[%c27, %c0_6], %6 {strides = array<i32>} : memref<32x256xf32, #tpu.memory_space<vmem>>, vector<5x256xf32>,
    %c0_7 = arith.constant 0 : index
    %c0_8 = arith.constant 0 : index
    %8 = vector.load %arg5[%c0_7, %c0_8] : memref<3x384xf32, #tpu.memory_space<vmem>>, vector<3x256xf32>
    %c0_9 = arith.constant 0 : index
    %c0_10 = arith.constant 0 : index
    %9 = vector.load %arg6[%c0_9, %c0_10] : memref<32x256xf32, #tpu.memory_space<vmem>>, vector<3x256xf32>
    tpu.vector_store %arg6[%c0_9, %c0_10], %8 {strides = array<i32>} : memref<32x256xf32, #tpu.memory_space<vmem>>, vector<3x256xf32>,
    %c0_11 = arith.constant 0 : index
    %c1 = arith.constant 1 : index
    %10 = vector.load %arg5[%c0_11, %c1] : memref<3x384xf32, #tpu.memory_space<vmem>>, vector<3x256xf32>
    %c3 = arith.constant 3 : index
    %c0_12 = arith.constant 0 : index
    %11 = vector.load %arg6[%c3, %c0_12] : memref<32x256xf32, #tpu.memory_space<vmem>>, vector<3x256xf32>
    tpu.vector_store %arg6[%c3, %c0_12], %10 {strides = array<i32>} : memref<32x256xf32, #tpu.memory_space<vmem>>, vector<3x256xf32>,
    %c0_13 = arith.constant 0 : index
    %c2 = arith.constant 2 : index
    %12 = vector.load %arg5[%c0_13, %c2] : memref<3x384xf32, #tpu.memory_space<vmem>>, vector<3x256xf32>
    %c6 = arith.constant 6 : index
    %c0_14 = arith.constant 0 : index
    %13 = vector.load %arg6[%c6, %c0_14] : memref<32x256xf32, #tpu.memory_space<vmem>>, vector<3x256xf32>
    tpu.vector_store %arg6[%c6, %c0_14], %12 {strides = array<i32>} : memref<32x256xf32, #tpu.memory_space<vmem>>, vector<3x256xf32>,
    %c0_15 = arith.constant 0 : index
    %c16 = arith.constant 16 : index
    %14 = vector.load %arg5[%c0_15, %c16] : memref<3x384xf32, #tpu.memory_space<vmem>>, vector<3x256xf32>
    %c9 = arith.constant 9 : index
    %c0_16 = arith.constant 0 : index
    %15 = vector.load %arg6[%c9, %c0_16] : memref<32x256xf32, #tpu.memory_space<vmem>>, vector<3x256xf32>
    tpu.vector_store %arg6[%c9, %c0_16], %14 {strides = array<i32>} : memref<32x256xf32, #tpu.memory_space<vmem>>, vector<3x256xf32>,
    %c0_17 = arith.constant 0 : index
    %c17 = arith.constant 17 : index
    %16 = vector.load %arg5[%c0_17, %c17] : memref<3x384xf32, #tpu.memory_space<vmem>>, vector<3x256xf32>
    %c12 = arith.constant 12 : index
    %c0_18 = arith.constant 0 : index
    %17 = vector.load %arg6[%c12, %c0_18] : memref<32x256xf32, #tpu.memory_space<vmem>>, vector<3x256xf32>
    tpu.vector_store %arg6[%c12, %c0_18], %16 {strides = array<i32>} : memref<32x256xf32, #tpu.memory_space<vmem>>, vector<3x256xf32>,
    %c0_19 = arith.constant 0 : index
    %c18 = arith.constant 18 : index
    %18 = vector.load %arg5[%c0_19, %c18] : memref<3x384xf32, #tpu.memory_space<vmem>>, vector<3x256xf32>
    %c15 = arith.constant 15 : index
    %c0_20 = arith.constant 0 : index
    %19 = vector.load %arg6[%c15, %c0_20] : memref<32x256xf32, #tpu.memory_space<vmem>>, vector<3x256xf32>
    tpu.vector_store %arg6[%c15, %c0_20], %18 {strides = array<i32>} : memref<32x256xf32, #tpu.memory_space<vmem>>, vector<3x256xf32>,
    %c0_21 = arith.constant 0 : index
    %c32 = arith.constant 32 : index
    %20 = vector.load %arg5[%c0_21, %c32] : memref<3x384xf32, #tpu.memory_space<vmem>>, vector<3x256xf32>
    %c18_22 = arith.constant 18 : index
    %c0_23 = arith.constant 0 : index
    %21 = vector.load %arg6[%c18_22, %c0_23] : memref<32x256xf32, #tpu.memory_space<vmem>>, vector<3x256xf32>
    tpu.vector_store %arg6[%c18_22, %c0_23], %20 {strides = array<i32>} : memref<32x256xf32, #tpu.memory_space<vmem>>, vector<3x256xf32>,
    %c0_24 = arith.constant 0 : index
    %c33 = arith.constant 33 : index
    %22 = vector.load %arg5[%c0_24, %c33] : memref<3x384xf32, #tpu.memory_space<vmem>>, vector<3x256xf32>
    %c21 = arith.constant 21 : index
    %c0_25 = arith.constant 0 : index
    %23 = vector.load %arg6[%c21, %c0_25] : memref<32x256xf32, #tpu.memory_space<vmem>>, vector<3x256xf32>
    tpu.vector_store %arg6[%c21, %c0_25], %22 {strides = array<i32>} : memref<32x256xf32, #tpu.memory_space<vmem>>, vector<3x256xf32>,
    %c0_26 = arith.constant 0 : index
    %c34 = arith.constant 34 : index
    %24 = vector.load %arg5[%c0_26, %c34] : memref<3x384xf32, #tpu.memory_space<vmem>>, vector<3x256xf32>
    %c24 = arith.constant 24 : index
    %c0_27 = arith.constant 0 : index
    %25 = vector.load %arg6[%c24, %c0_27] : memref<32x256xf32, #tpu.memory_space<vmem>>, vector<3x256xf32>
    tpu.vector_store %arg6[%c24, %c0_27], %24 {strides = array<i32>} : memref<32x256xf32, #tpu.memory_space<vmem>>, vector<3x256xf32>,
    %c0_28 = arith.constant 0 : index
    %c0_29 = arith.constant 0 : index
    %26 = vector.load %arg2[%c0_28, %c0_29] : memref<8x32xbf16, #tpu.memory_space<vmem>>, vector<8x32xbf16>
    %c0_30 = arith.constant 0 : index
    %c0_31 = arith.constant 0 : index
    %27 = vector.load %arg6[%c0_30, %c0_31] : memref<32x256xf32, #tpu.memory_space<vmem>>, vector<32x256xf32>
    %28 = arith.truncf %27 : vector<32x256xf32> to vector<32x256xbf16>
    %cst_32 = arith.constant dense<0.000000e+00> : vector<8x256xf32>
    %29 = tpu.matmul %26, %28, %cst_32 {dimension_numbers = #tpu.dot_dimension_numbers<[1], [0], [0], [1], [0, 0, 1, 1], [], []>} : vector<8x32xbf16>, vector<32x256xbf16>, vector<8x256xf32> -> vector<8x256xf32>
    %c0_33 = arith.constant 0 : index
    %c0_34 = arith.constant 0 : index
    %30 = vector.load %arg3[%c0_33, %c0_34] : memref<8x1xf32, #tpu.memory_space<vmem>>, vector<8x1xf32>
    %31 = vector.broadcast %30 : vector<8x1xf32> to vector<8x256xf32>
    %32 = arith.addf %29, %31 : vector<8x256xf32>
    %c0_35 = arith.constant 0 : index
    %c0_36 = arith.constant 0 : index
    %c0_37 = arith.constant 0 : index
    %33 = vector.load %arg4[%c0_35, %c0_36, %c0_37] : memref<1x8x256xf32, #tpu.memory_space<vmem>>, vector<1x8x256xf32>
    %34 = vector.shape_cast %33 : vector<1x8x256xf32> to vector<8x256xf32>
    %35 = vector.shape_cast %32 : vector<8x256xf32> to vector<1x8x256xf32>
    tpu.vector_store %arg4[%c0_35, %c0_36, %c0_37], %35 {strides = array<i32>} : memref<1x8x256xf32, #tpu.memory_space<vmem>>, vector<1x8x256xf32>,
    return
  }
  func.func @transform_0(%arg0: i32) -> (i32, i32, i32) {
    %c0_i32 = arith.constant 0 : i32
    %c0_i32_0 = arith.constant 0 : i32
    %c0_i32_1 = arith.constant 0 : i32
    return %arg0, %c0_i32, %c0_i32_0 : i32, i32, i32
  }
  func.func @transform_1(%arg0: i32) -> (i32, i32) {
    %c0_i32 = arith.constant 0 : i32
    %c0_i32_0 = arith.constant 0 : i32
    %c0_i32_1 = arith.constant 0 : i32
    return %c0_i32, %c0_i32_0 : i32, i32
  }
  func.func @transform_2(%arg0: i32) -> (i32, i32) {
    %c0_i32 = arith.constant 0 : i32
    %c0_i32_0 = arith.constant 0 : i32
    %c0_i32_1 = arith.constant 0 : i32
    return %c0_i32, %c0_i32_0 : i32, i32
  }
  func.func @transform_3(%arg0: i32) -> (i32, i32, i32) {
    %c0_i32 = arith.constant 0 : i32
    %c0_i32_0 = arith.constant 0 : i32
    %c0_i32_1 = arith.constant 0 : i32
    return %arg0, %c0_i32, %c0_i32_0 : i32, i32, i32
  }
}

</mosaic_0001>

<bundles_post_ra>
// kernel: tpu_custom_call.1
= control target key start
LH: loop header
LB: loop body
LE: loop exit
PB: predicated region body
PF: predicated region fallthrough
CT: control target
= control target key end

     0   :  { %8 = vsyncpa [#allocation5], 0  ;;  %s811_s0 = inlined_call_operand.vmem [shape: bf16[2,3,256], index: 0, kind: input, shape index: {}]   ;;  %s812_s1 = inlined_call_operand.vmem [shape: bf16[8,32], index: 1, kind: input, shape index: {}]   ;;  %s813_s2 = inlined_call_operand.vmem [shape: f32[8,1], index: 2, kind: input, shape index: {}]   ;;  %s814_s3 = inlined_call_operand.hbm [shape: f32[2,8,256], index: 3, kind: output, shape index: {}]  }
   0x1   :  { %10 = vsyncpa [#allocation5 + $0x1], 0  ;;  %s705_s12 = smov 0   ;;  %s707_s13 = smov 0  }
   0x2   :  { %s709_s14 = smov 0   ;;  %s711_s15 = smov 0  }
   0x3 LB: > { %s726_s16 = sadd.s32 4294967295, %s673_s15   ;;  %s519_s17 = sadd.s32 4294967294, %s673_s15   ;;  %s673_s15 = sphi %s711_s15, %s820_s15   ;;  %s669_s14 = sphi %s709_s14, %s819_s14   ;;  %s665_s13 = sphi %s707_s13, %s818_s13   ;;  %s661_s12 = sphi %s705_s12, %s817_s12  }
   0x4   : > { %s730_s18 = sadd.s32 1, %s673_s15   ;;  %s91_s19 = sadd.s32 1, %s669_s14 }
   0x5   : > { %s88_s20 = ssub.s32 %s673_s15, %s730_s18  ;;  %p101_p0 = scmp.ne.s32.totalorder %s669_s14, %s665_s13 }
   0x6   : > { %p89_p1 = scmp.eq.s32.totalorder %s88_s20, 0  ;;  %p102_p2 = scmp.eq.s32.totalorder %s726_s16, 1 }
   0x7   : > { %p107_p3 = scmp.ne.s32.totalorder %s665_s13, %s661_s12  ;;  %p108_p4 = scmp.eq.s32.totalorder %s519_s17, 1 }
   0x8   : > { %s741_s21 = scalar_select %p89_p1, %s669_s14, %s91_s19  }
   0x9   : > { %p743_p5 = por %p102_p2, %p101_p0  ;;  %p747_p6 = por %p108_p4, %p107_p3 }
   0xa   : > { %p522_p7 = scmp.ge.s32.totalorder %s673_s15, 1  ;;  %p140_p8 = scmp.lt.s32.totalorder %s673_s15, 3 }
   0xc   : > { %p141_p9 = pnand %p522_p7, %p140_p8 }
   0xd   : > { %p164_p10 = scmp.lt.s32.totalorder (!%p141_p9), %s726_s16, 1  ;;  %s676_s29 = smov (!%p141_p9), 127  }
   0xe   : > { %144 = sbr.rel (%p141_p9) target bundleno = 379 (0x17b), region = 32  ;;  %s677_s30 = smov (!%p141_p9), 126  }
   0xf   : > { %s678_s4 = smov (!%p141_p9), 112   ;;  %s679_s5 = smov (!%p141_p9), 110  }
  0x10   : > { %s680_s6 = smov (!%p141_p9), 96   ;;  %s681_s7 = smov (!%p141_p9), 95  }
  0x11   : > { %s682_s8 = smov (!%p141_p9), 94   ;;  %s683_s9 = smov (!%p141_p9), 111  }
  0x12   : > { %s161_s20 = sand.u32 (!%p141_p9), 1, %s665_s13  }
  0x13   : > { %v675_v0 = vmov 0.0   ;;  %s165_s24 = scalar_select %p164_p10, %s726_s16, 1  ;;  %vm204_vm0 = vcmask 1039360   ;;  %vm230_vm1 = vcmask 1031168   ;;  %vm258_vm2 = vcmask 916480  }
  0x14   : > { %173 = vst [vmem:[#allocation2 + $0x8] sm:$0x7] %v675_v0  ;;  %vm362_vm3 = vcmask 777216   ;;  %vm282_vm4 = vcmask 908288   ;;  %vm308_vm5 = vcmask 900096   ;;  %vm336_vm6 = vcmask 785408  }
  0x15   : > { %174 = vst [vmem:[#allocation3 + $0x20] sm:$0xf8] %v675_v0  ;;  %s533_s25 = sshll.u32 %s165_s24, 2  ;;  %vm385_vm7 = vcmask 769024   ;;  %vm411_vm8 = vcmask 261120   ;;  %s534_s24 = sshll.u32 %s726_s16, 4 }
  0x16   : > { %175 = vst [vmem:[#allocation3 + $0x30] sm:$0xf8] %v675_v0  ;;  %s168_s28 = scalar_lea.vmem %s811_s0, %s533_s25  ;;  %s523_s25 = sshll.u32 %s161_s20, 4 }
  0x17   : > { %v170_v1 = vld [vmem:[%s168_s28] sm:$0xf]  ;;  %s455_s28 = scalar_lea.hbm %s814_s3, %s534_s24 }
  0x18   : > { %v171_v2 = vunpack.c.l.bf16 %v170_v1 }
  0x1a   : > { %172 = vst [vmem:[#allocation2] sm:$0x77] %v171_v2 }
  0x1b   : > { %v186_v3 = vld [vmem:[#allocation2 + $0x8] sm:$0x7] }
  0x1c   : > { %191 = vst [vmem:[#allocation1 + $0x10] ss:$2 sm:$0xff] %v186_v3  ;;  %v212_v5 = vld [vmem:[#allocation2 + $0x8] sm:$0x7] }
  0x1d   : > { %v240_v11 = vld [vmem:[#allocation2 + $0x8] sm:$0x7] }
  0x1e   : > { %v266_v18 = vld [vmem:[#allocation2 + $0x8] sm:$0x7] }
  0x1f   : > { %v290_v25 = vld [vmem:[#allocation2 + $0x8] sm:$0x7] }
  0x20   : > { %v318_v31 = vld [vmem:[#allocation2 + $0x8] sm:$0x7] }
  0x21   : > { %v176_v4 = vld [vmem:[#allocation2] sm:$0x77]  ;;  %v344_v38 = vld [vmem:[#allocation2 + $0x8] sm:$0x7] }
  0x22   : > { %178 = vst [vmem:[#allocation1] ss:$2 sm:$0xff] %v176_v4  ;;  %v185_v8 = vld [vmem:[#allocation2] sm:$0x77]  ;;  %v370_v45 = vld [vmem:[#allocation2 + $0x8] sm:$0x7] }
  0x23   : > { %v194_v6 = vld.sshfl [vmem:[#allocation1 + $0x10] sm:$0xff pattern:$0x75316420]  ;;  %v211_v14 = vld [vmem:[#allocation2] sm:$0x77] }
  0x24   : > { %v197_v7 = vrot.slane %v194_v6, 5  ;;  %217 = vst [vmem:[#allocation1 + $0x10] ss:$2 sm:$0xff] %v212_v5  ;;  %v239_v21 = vld [vmem:[#allocation2] sm:$0x77] }
  0x25   : > { %v265_v28 = vld [vmem:[#allocation2] sm:$0x77] }
  0x26   : > { %202 = vrot.lane.b32.xlu1 %v197_v7, %s676_s29  ;;  %v289_v35 = vld [vmem:[#allocation2] sm:$0x77] }
  0x27   : > { %v317_v42 = vld [vmem:[#allocation2] sm:$0x77] }
  0x28   : > { %v343_v51 = vld [vmem:[#allocation2] sm:$0x77] }
  0x29   : > { %v179_v9 = vld.sshfl [vmem:[#allocation1] sm:$0xff pattern:$0x75316420]  ;;  %v180_v10 = vld.sshfl [vmem:[#allocation1 + $0x8] sm:$0xff pattern:$0x75316420] }
  0x2a   : > { %189 = vst [vmem:[#allocation1] ss:$2 sm:$0xff] %v185_v8  ;;  %v369_v57 = vld [vmem:[#allocation2] sm:$0x77] }
  0x2b   : > { %183 = vst [vmem:[#allocation3 + $0x8] sm:$0x7] %v179_v9  ;;  %v220_v12 = vld.sshfl [vmem:[#allocation1 + $0x10] sm:$0xff pattern:$0x75316420] }
  0x2c   : > { %184 = vst [vmem:[#allocation3] sm:$0x7] %v180_v10  ;;  %v223_v13 = vrot.slane %v220_v12, 2 }
  0x2d   : > { %245 = vst [vmem:[#allocation1 + $0x10] ss:$2 sm:$0xff] %v240_v11 }
  0x2e   : > { %228 = vrot.lane.b32.xlu1 %v223_v13, %s677_s30 }
  0x31   : > { %v193_v15 = vld.sshfl [vmem:[#allocation1 + $0x8] sm:$0xff pattern:$0x75316420]  ;;  %v192_v16 = vld.sshfl [vmem:[#allocation1] sm:$0xff pattern:$0x75316420] }
  0x32   : > { %v196_v17 = vrot.slane %v193_v15, 5  ;;  %215 = vst [vmem:[#allocation1] ss:$2 sm:$0xff] %v211_v14  ;;  %v195_v19 = vrot.slane %v192_v16, 5 }
  0x34   : > { %200 = vrot.lane.b32.xlu0 %v196_v17, %s676_s29  ;;  %v758_v20 = vld.sshfl [vmem:[#allocation1 + $0x10] sm:$0xff pattern:$0x75316420]  ;;  %198 = vrot.lane.b32.xlu2 %v195_v19, %s676_s29  ;;  %s163_s29 = scalar_lea.vmem [#allocation4], %s523_s25 }
  0x35   : > { %272 = vst [vmem:[#allocation1 + $0x11] ss:$2 sm:$0xff] %v266_v18  ;;  %v251_v0 = vrot.slane %v758_v20, 7 }
  0x39   : > { %v219_v22 = vld.sshfl [vmem:[#allocation1 + $0x8] sm:$0xff pattern:$0x75316420]  ;;  %v218_v23 = vld.sshfl [vmem:[#allocation1] sm:$0xff pattern:$0x75316420] }
  0x3a   : > { %v222_v24 = vrot.slane %v219_v22, 2  ;;  %243 = vst [vmem:[#allocation1] ss:$2 sm:$0xff] %v239_v21  ;;  %v221_v26 = vrot.slane %v218_v23, 2 }
  0x3c   : > { %226 = vrot.lane.b32.xlu0 %v222_v24, %s677_s30  ;;  %v760_v27 = vld.sshfl [vmem:[#allocation1 + $0x10] sm:$0xff pattern:$0x75316420]  ;;  %224 = vrot.lane.b32.xlu2 %v221_v26, %s677_s30  ;;  %s457_s30 = sshll.u32 %s163_s29, 4  ;;  %s458_s30 = int_to_ptr.vmem [resolvable:$true] %s457_s30 }
  0x3d   : > { %295 = vst [vmem:[#allocation1 + $0x10] ss:$2 sm:$0xff] %v290_v25 }
  0x41   : > { %v247_v29 = vld.sshfl [vmem:[#allocation1 + $0x8] sm:$0xff pattern:$0x75316420]  ;;  %v246_v30 = vld.sshfl [vmem:[#allocation1] sm:$0xff pattern:$0x75316420] }
  0x42   : > { %270 = vst [vmem:[#allocation1 + $0x1] ss:$2 sm:$0xff] %v265_v28  ;;  %v249_v32 = vrot.slane %v246_v30, 7  ;;  %v250_v39 = vrot.slane %v247_v29, 7 }
  0x44   : > { %v298_v33 = vld.sshfl [vmem:[#allocation1 + $0x10] sm:$0xff pattern:$0x75316420]  ;;  %252 = vrot.lane.b32.xlu2 %v249_v32, %s678_s4 }
  0x45   : > { %v301_v34 = vrot.slane %v298_v33, 1  ;;  %323 = vst [vmem:[#allocation1 + $0x10] ss:$2 sm:$0xff] %v318_v31 }
  0x47   : > { %306 = vrot.lane.b32.xlu0 %v301_v34, %s679_s5 }
  0x49   : > { %v273_v36 = vld.sshfl [vmem:[#allocation1] sm:$0xff pattern:$0x75316420]  ;;  %v274_v37 = vld.sshfl [vmem:[#allocation1 + $0x8] sm:$0xff pattern:$0x75316420] }
  0x4a   : > { %293 = vst [vmem:[#allocation1] ss:$2 sm:$0xff] %v289_v35  ;;  %v604_v4 = vpack.i.bf16 %v274_v37, %v273_v36  ;;  %v405_v36 = vld [vmem:[%s813_s2] sm:$0xff]  ;;  %v684_v37 = vmov 0  }
  0x4b   : > { %609 = vset.pattern.permute.xlu1 %v684_v37  ;;  %610 = vset.pattern.permute.xlu0 %v684_v37 }
  0x4c   : > { %v326_v40 = vld.sshfl [vmem:[#allocation1 + $0x10] sm:$0xff pattern:$0x75316420] }
  0x4d   : > { %v329_v41 = vrot.slane %v326_v40, 6  ;;  %349 = vst [vmem:[#allocation1 + $0x10] ss:$2 sm:$0xff] %v344_v38 }
  0x4f   : > { %254 = vrot.lane.b32.xlu0 %v250_v39, %s678_s4  ;;  %334 = vrot.lane.b32.xlu1 %v329_v41, %s680_s6 }
  0x51   : > { %v296_v43 = vld.sshfl [vmem:[#allocation1] sm:$0xff pattern:$0x75316420]  ;;  %v297_v44 = vld.sshfl [vmem:[#allocation1 + $0x8] sm:$0xff pattern:$0x75316420] }
  0x52   : > { %v299_v46 = vrot.slane %v296_v43, 1  ;;  %v300_v47 = vrot.slane %v297_v44, 1  ;;  %321 = vst [vmem:[#allocation1] ss:$2 sm:$0xff] %v317_v42 }
  0x54   : > { %v352_v48 = vld.sshfl [vmem:[#allocation1 + $0x10] sm:$0xff pattern:$0x75316420]  ;;  %v584_v49 = vpack.i.bf16 %v300_v47, %v299_v46 }
  0x55   : > { %375 = vst [vmem:[#allocation1 + $0x10] ss:$2 sm:$0xff] %v370_v45  ;;  %v355_v50 = vrot.slane %v352_v48, 3 }
  0x57   : > { %585 = vrot.lane.b32.xlu0 %v584_v49, %s679_s5  ;;  %360 = vrot.lane.b32.xlu2 %v355_v50, %s681_s7  ;;  %s444_s5 = scalar_lea.sflag [#allocation5], %s161_s20 }
  0x59   : > { %v324_v52 = vld.sshfl [vmem:[#allocation1] sm:$0xff pattern:$0x75316420]  ;;  %v325_v53 = vld.sshfl [vmem:[#allocation1 + $0x8] sm:$0xff pattern:$0x75316420] }
  0x5a   : > { %347 = vst [vmem:[#allocation1] ss:$2 sm:$0xff] %v343_v51  ;;  %v327_v55 = vrot.slane %v324_v52, 6  ;;  %v328_v56 = vrot.slane %v325_v53, 6 }
  0x5c   : > { %v378_v54 = vld.sshfl [vmem:[#allocation1 + $0x10] sm:$0xff pattern:$0x75316420]  ;;  %v589_v58 = vpack.i.bf16 %v328_v56, %v327_v55 }
  0x5d   : > { %383 = vrot.lane.b32.xlu1 %v378_v54, %s682_s8 }
  0x61   : > { %v350_v59 = vld.sshfl [vmem:[#allocation1] sm:$0xff pattern:$0x75316420]  ;;  %v351_v60 = vld.sshfl [vmem:[#allocation1 + $0x8] sm:$0xff pattern:$0x75316420] }
  0x62   : > { %v353_v61 = vrot.slane %v350_v59, 3  ;;  %v354_v62 = vrot.slane %v351_v60, 3  ;;  %373 = vst [vmem:[#allocation1] ss:$2 sm:$0xff] %v369_v57 }
  0x64   : > { %v594_v63 = vpack.i.bf16 %v354_v62, %v353_v61 }
  0x65   : > { %590 = vrot.lane.b32.xlu1 %v589_v58, %s680_s6 }
  0x66   : > { %595 = vrot.lane.b32.xlu2 %v594_v63, %s681_s7 }
  0x69   : > { %v376_v1 = vld.sshfl [vmem:[#allocation1] sm:$0xff pattern:$0x75316420]  ;;  %v377_v2 = vld.sshfl [vmem:[#allocation1 + $0x8] sm:$0xff pattern:$0x75316420] }
  0x6a   : > { %v599_v3 = vpack.i.bf16 %v377_v2, %v376_v1 }
  0x6c   : > { %600 = vrot.lane.b32.xlu0 %v599_v3, %s682_s8 }
  0x6d   : > { %256 = vrot.lane.b32.xlu1 %v251_v0, %s678_s4  ;;  %v392_v0 = vld [vmem:[%s812_s1] sm:$0xf]  ;;  %s459_s4 = sshll.u32 %s455_s28, 4  ;;  %s460_s4 = int_to_ptr.hbm [resolvable:$true] %s459_s4 }
  0x6e   : > { %605 = vrot.lane.b32.xlu2 %v604_v4, %s683_s9  ;;  %s625_s16 = sshra.s32 %s460_s4, 4  ;;  %s626_s16 = int_to_ptr.hbm [resolvable:$true] %s625_s16 }
  0x6f   : > { %s627_s6 = scalar_lea.hbm %s626_s16, 16  ;;  %p632_p0 = scmp.lt.s32.totalorder %s626_s16, %s814_s3 }
  0x70   : > { %p628_p11 = scmp.ne.s32.totalorder %s626_s16, %s627_s6 }
  0x72   : > { %p629_p12 = pnand %p628_p11, %p743_p5 }
  0x74   : > { %280 = vrot.lane.b32.xlu0 %v760_v27, %s683_s9  ;;  %p630_p13 = pneg %p629_p12  ;;  %s631_s9 = scalar_lea.hbm %s814_s3, 32 }
  0x75   : > { %408 = vperm.xlu1 %609, %v405_v36   ;;  %p633_p1 = scmp.lt.s32.totalorder %s631_s9, %s627_s6 }
  0x77   : > { %p634_p2 = por %p633_p1, %p632_p0 }
  0x79   : > { %p635_p3 = pnand %p634_p2, %p630_p13 }
  0x8e   : > { %v199_v5 = vpop.permute.xlu2 %198 }
  0x96   : > { %v225_v6 = vpop.permute.xlu2 %224 }
  0x98   : > { %v203_v7 = vpop.permute.xlu1 %202 }
  0x9e   : > { %v253_v11 = vpop.permute.xlu2 %252 }
  0xa0   : > { %v229_v12 = vpop.permute.xlu1 %228 }
  0xa6   : > { %v201_v8 = vpop.permute.xlu0 %200 }
  0xa7   : > { %v205_v9 = vsel %vm204_vm0, %v199_v5, %v201_v8  ;;  %v206_v10 = vsel %vm204_vm0, %v201_v8, %v203_v7 }
  0xa8   : > { %209 = vst [vmem:[#allocation3 + $0x8] sm:$0x38] %v205_v9 }
  0xa9   : > { %210 = vst [vmem:[#allocation3] sm:$0x38] %v206_v10 }
  0xae   : > { %v227_v13 = vpop.permute.xlu0 %226 }
  0xaf   : > { %v231_v14 = vsel %vm230_vm1, %v225_v6, %v227_v13  ;;  %v232_v15 = vsel %vm230_vm1, %v227_v13, %v229_v12 }
  0xb0   : > { %235 = vst [vmem:[#allocation3 + $0x8] sm:$0xc0] %v231_v14 }
  0xb1   : > { %237 = vst [vmem:[#allocation3 + $0x38] sm:$0x1] %v231_v14  ;;  %v361_v16 = vpop.permute.xlu2 %360 }
  0xb2   : > { %236 = vst [vmem:[#allocation3] sm:$0xc0] %v232_v15 }
  0xb3   : > { %238 = vst [vmem:[#allocation3 + $0x10] sm:$0x1] %v232_v15 }
  0xb7   : > { %v393_v59 = vld [vmem:[#allocation3 + $0x8] sm:$0xff] }
  0xb9   : > { %v307_v17 = vpop.permute.xlu0 %306  ;;  %v394_v61 = vld [vmem:[#allocation3] sm:$0xff] }
  0xc0   : > { %v596_v18 = vpop.permute.xlu2 %595 }
  0xc1   : > { %v255_v19 = vpop.permute.xlu0 %254  ;;  %v598_v20 = vunpack.i.h.bf16 %v596_v18  ;;  %v597_v21 = vunpack.i.l.bf16 %v596_v18  ;;  %v335_v25 = vpop.permute.xlu1 %334 }
  0xc2   : > { %v259_v22 = vsel %vm258_vm2, %v253_v11, %v255_v19 }
  0xc3   : > { %263 = vst [vmem:[#allocation3 + $0x38] sm:$0xe] %v259_v22  ;;  %v364_v23 = vsel %vm362_vm3, %v598_v20, %v361_v16  ;;  %v363_v24 = vsel %vm362_vm3, %v597_v21, %v598_v20 }
  0xc4   : > { %368 = vst [vmem:[#allocation3 + $0x28] sm:$0xe0] %v364_v23 }
  0xc5   : > { %367 = vst [vmem:[#allocation3 + $0x18] sm:$0xe0] %v363_v24 }
  0xc8   : > { %v606_v26 = vpop.permute.xlu2 %605 }
  0xc9   : > { %v586_v27 = vpop.permute.xlu0 %585  ;;  %v608_v28 = vunpack.i.h.bf16 %v606_v26  ;;  %v607_v29 = vunpack.i.l.bf16 %v606_v26 }
  0xca   : > { %v588_v30 = vunpack.i.h.bf16 %v586_v27  ;;  %v587_v31 = vunpack.i.l.bf16 %v586_v27 }
  0xcb   : > { %v283_v32 = vsel %vm282_vm4, %v607_v29, %v608_v28 }
  0xcc   : > { %v310_v33 = vsel %vm308_vm5, %v588_v30, %v307_v17  ;;  %v309_v34 = vsel %vm308_vm5, %v587_v31, %v588_v30  ;;  %287 = vst [vmem:[#allocation3 + $0x38] sm:$0x70] %v283_v32 }
  0xcd   : > { %314 = vst [vmem:[#allocation3 + $0x10] sm:$0x80] %v310_v33 }
  0xce   : > { %316 = vst [vmem:[#allocation3 + $0x28] sm:$0x3] %v310_v33 }
  0xcf   : > { %313 = vst [vmem:[#allocation3 + $0x38] sm:$0x80] %v309_v34  ;;  %v384_v35 = vpop.permute.xlu1 %383 }
  0xd0   : > { %315 = vst [vmem:[#allocation3 + $0x18] sm:$0x3] %v309_v34 }
  0xd6   : > { %v395_v58 = vld [vmem:[#allocation3 + $0x38] sm:$0xff] }
  0xd7   : > { %v591_v38 = vpop.permute.xlu1 %590  ;;  %v401_v60 = vpack.c.bf16 %v395_v58, %v393_v59 }
  0xd8   : > { %v593_v39 = vunpack.i.h.bf16 %v591_v38  ;;  %v592_v40 = vunpack.i.l.bf16 %v591_v38 }
  0xda   : > { %v338_v41 = vsel %vm336_vm6, %v593_v39, %v335_v25  ;;  %v337_v42 = vsel %vm336_vm6, %v592_v40, %v593_v39 }
  0xdb   : > { %342 = vst [vmem:[#allocation3 + $0x28] sm:$0x1c] %v338_v41 }
  0xdc   : > { %341 = vst [vmem:[#allocation3 + $0x18] sm:$0x1c] %v337_v42 }
  0xde   : > { %v601_v43 = vpop.permute.xlu0 %600 }
  0xdf   : > { %v257_v44 = vpop.permute.xlu1 %256  ;;  %v603_v45 = vunpack.i.h.bf16 %v601_v43  ;;  %v602_v46 = vunpack.i.l.bf16 %v601_v43 }
  0xe0   : > { %v260_v47 = vsel %vm258_vm2, %v255_v19, %v257_v44 }
  0xe1   : > { %264 = vst [vmem:[#allocation3 + $0x10] sm:$0xe] %v260_v47  ;;  %v387_v48 = vsel %vm385_vm7, %v603_v45, %v384_v35  ;;  %v386_v49 = vsel %vm385_vm7, %v602_v46, %v603_v45 }
  0xe2   : > { %391 = vst [vmem:[#allocation3 + $0x30] sm:$0x7] %v387_v48  ;;  %v398_v52 = vld [vmem:[#allocation3 + $0x28] sm:$0xff] }
  0xe3   : > { %390 = vst [vmem:[#allocation3 + $0x20] sm:$0x7] %v386_v49  ;;  %v397_v54 = vld [vmem:[#allocation3 + $0x18] sm:$0xff] }
  0xe6   : > { %v281_v50 = vpop.permute.xlu0 %280 }
  0xe7   : > { %v284_v51 = vsel %vm282_vm4, %v608_v28, %v281_v50  ;;  %v409_v1 = vpop.permute.xlu1 %408 }
  0xe8   : > { %288 = vst [vmem:[#allocation3 + $0x10] sm:$0x70] %v284_v51 }
  0xe9   : > { %v400_v53 = vld [vmem:[#allocation3 + $0x30] sm:$0xff] }
  0xea   : > { %v399_v55 = vld [vmem:[#allocation3 + $0x20] sm:$0xff]  ;;  %v404_v56 = vpack.c.bf16 %v400_v53, %v398_v52 }
  0xeb   : > { %v403_v57 = vpack.c.bf16 %v399_v55, %v397_v54 }
  0xec   : > { %434 = vmatpush.bf16.msra.mxu1 %v404_v56 }
  0xed   : > { %421 = vmatpush.bf16.msra.mxu0 %v403_v57 }
  0xef   : > { %v396_v62 = vld [vmem:[#allocation3 + $0x10] sm:$0xff] }
  0xf0   : > { %v402_v63 = vpack.c.bf16 %v396_v62, %v394_v61 }
  0xf1   : > { %422 = vmatpush.bf16.msra.mxu0 %v401_v60 }
  0xf2   : > { %435 = vmatpush.bf16.msra.mxu1 %v402_v63 }
  0xf4   : > { %526 = vmatmul.msk.bf16.vlgmr.msra.gmra.mxu0 %vm411_vm8, %v392_v0 }
  0xf5   : > { %527 = vmatmul.msk.bf16.vlgmr.msra.gmra.mxu1 %vm411_vm8, %v392_v0 }
 0x171   : > { %v424_v2 = vpop.f32.mrf.mxu0 }
 0x172   : > { %v425_v3 = vadd.f32 %v424_v2, %v409_v1  ;;  %v437_v4 = vpop.f32.mrf.mxu1 }
 0x173   : > { %v438_v5 = vadd.f32 %v437_v4, %v409_v1 }
 0x174   : > { %441 = vst [vmem:[%s163_s29] sm:$0xff] %v425_v3 }
 0x175   : > { %442 = vst [vmem:[%s163_s29 + $0x8] sm:$0xff] %v438_v5 }
 0x176   : > { %638 = shalt.err (!%p635_p3)
}
 0x177   : > { %535 = dma.vmem_to_hbm [thread:$0]  (%p743_p5), %s458_s30, 256, %s460_s4, %s444_s5  }
 0x179   : > { %v426_v6 = vpop.f32.mrf.mxu0 }
 0x17a   : > { %v439_v7 = vpop.f32.mrf.mxu1 }
 0x17b PF: > { %p541_p4 = scmp.ge.s32.totalorder %s673_s15, 2  ;;  %s471_s17 = sand.u32 1, %s661_s12  }
 0x17c   : > { %s472_s19 = scalar_lea.sflag [#allocation5], %s471_s17 }
 0x17d   : > { %p538_p7 = pnand %p541_p4, %p747_p6 }
 0x17f   : > { %p539_p8 = pneg %p538_p7 }
 0x181   : > { %656 = dma.done.wait (%p539_p8), %s472_s19, 256  }
 0x182   : > { %658 = vsyncadd (%p539_p8), %s472_s19, 4294967040  ;;  %p13_p5 = scmp.ge.s32.totalorder %s730_s18, 4   ;;  %s817_s12 = smov %s665_s13 }
 0x183   : > { %s818_s13 = smov %s669_s14  ;;  %s819_s14 = smov %s741_s21 }
 0x184   : > { %s820_s15 = smov %s730_s18  ;;  %15 = sbr.rel (!%p13_p5) target bundleno = 3 (0x3), region = 76 }
 0x189   :  { %478 = vsyncpa [#allocation5], 1 }
 0x18a   :  { %480 = vsyncpa [#allocation5 + $0x1], 1 }

</bundles_post_ra>
